<compile_context>
chip_gen: v5e
topology: v5e:2x2
jax: 0.10.0
libtpu: 0.0.40
codegen_flags: <defaults>
</compile_context>

<pallas_src>
import functools
import math

import numpy as np
import jax
import jax.numpy as jnp
from jax.experimental import pallas as pl
from jax.experimental.pallas import tpu as pltpu


def _cdiv(a: int, b: int) -> int:
    return (a + b - 1) // b


# ----------------------------------------------------------------------------
# Bilinear interpolation matrices (align_corners=True), built in numpy so they
# become compile-time constants.
# ----------------------------------------------------------------------------
def _interp_matrix_np(out_size: int, in_size: int) -> np.ndarray:
    """(out_size, in_size) row-stochastic bilinear gather matrix, align_corners=True."""
    if out_size == 1:
        src = np.zeros((1,), dtype=np.float64)
    else:
        src = np.arange(out_size, dtype=np.float64) * ((in_size - 1) / (out_size - 1))
    lo = np.clip(np.floor(src).astype(np.int64), 0, in_size - 1)
    hi = np.minimum(lo + 1, in_size - 1)
    w_hi = (src - lo).astype(np.float32)
    w_lo = np.float32(1.0) - w_hi
    m = np.zeros((out_size, in_size), dtype=np.float32)
    rows = np.arange(out_size)
    np.add.at(m, (rows, lo), w_lo)
    np.add.at(m, (rows, hi), w_hi)
    return m


def _resize_h_nchw(x, out_h, out_dtype):
    """H-axis-only bilinear resize of NCHW; output emitted directly in out_dtype."""
    in_h = x.shape[2]
    mh = jnp.asarray(_interp_matrix_np(out_h, in_h))
    return jnp.einsum("oh,bchw->bcow", mh, x).astype(out_dtype)


def bilinear_resize_nchw(x, out_h, out_w):
    """Full F.interpolate(mode='bilinear', align_corners=True) (reference path)."""
    _, _, in_h, in_w = x.shape
    mh = jnp.asarray(_interp_matrix_np(out_h, in_h))
    mw = jnp.asarray(_interp_matrix_np(out_w, in_w))
    y = jnp.einsum("oh,bchw->bcow", mh, x)
    return jnp.einsum("pw,bcow->bcop", mw, y)


# ----------------------------------------------------------------------------
# Pallas kernel: per row-group --
#   width-upsample map logits -> softmax -> folded 1x1 conv at low width ->
#   width-upsample the per-class conv blocks -> seg-scaled combine ->
#   width-downsample -> store (already at feature width Wf).
# All arrays are rank-2, channels on sublanes, flattened (rows*W) pixels on
# lanes; all matmuls are plain 2-D MXU pushes, no in-kernel reshapes.
# ----------------------------------------------------------------------------
def _fbem_kernel(num_classes, channel, groups, lanes_m, lanes_f,
                 map_ref, feat_ref, w_ref, b_ref, up_m_ref, up_f_ref, down_ref,
                 out_ref):
    k, c = num_classes, channel
    up_m = up_m_ref[...]                      # (rg*Wm, rg*Wo)  f32, resident
    up_f = up_f_ref[...]                      # (rg*Wf, rg*Wo)  f32, resident
    down = down_ref[...]                      # (rg*Wo, rg*Wf)  f32, resident
    w = w_ref[...]                            # ((K+1)*C, C)    compute dtype, resident
    bias = b_ref[...].astype(jnp.float32)     # (C, 1)

    for g in range(groups):                   # unrolled; per-group temps stay small
        sl_m = slice(g * lanes_m, (g + 1) * lanes_m)
        sl_f = slice(g * lanes_f, (g + 1) * lanes_f)

        # Softmax over classes on the width-UPSAMPLED map.  Exact divide: the
        # approx EUP reciprocal's ~1e-3 error broke the f32 tolerance in rev 2.
        logits = jnp.dot(map_ref[:, sl_m].astype(jnp.float32), up_m,
                         preferred_element_type=jnp.float32)            # (K, Lo)
        logits = logits - jnp.max(logits, axis=0, keepdims=True)
        e = jnp.exp(logits)
        seg = e / jnp.sum(e, axis=0, keepdims=True)

        # Folded 1x1 conv at LOW width (it commutes with the width resize),
        # then width-upsample the stacked per-class output row blocks.
        z = jnp.dot(w, feat_ref[:, sl_f],
                    preferred_element_type=jnp.float32)                 # ((K+1)C, Lf)
        zu = jnp.dot(z, up_f, preferred_element_type=jnp.float32)       # ((K+1)C, Lo)

        acc = zu[0:c, :]                                                # folded block
        for i in range(k):
            acc = acc + seg[i:i + 1, :] * zu[(i + 1) * c:(i + 2) * c, :]

        # Width-downsample back to Wf; bilinear matrices are row-stochastic so
        # adding the bias after the downsample is exact.
        o = jnp.dot(acc, down, preferred_element_type=jnp.float32) + bias
        out_ref[:, sl_f] = o.astype(out_ref.dtype)


# ----------------------------------------------------------------------------
# Full FBEM_v6 forward (H-resize glue in JAX, everything else in Pallas).
# ----------------------------------------------------------------------------
def fbem_v6_forward(map_, feature, size, conv_w, conv_b, num_classes, *,
                    compute_dtype=jnp.bfloat16, target_tile_lanes=4096):
    """map_: (B,K,Hm,Wm), feature: (B,C,Hf,Wf), conv_w: (C,(K+1)*C), conv_b: (C,)."""
    b, k, hm, wm = map_.shape
    _, c, hf, wf = feature.shape
    ho, wo = size

    # --- H-axis bilinear upsample in plain JAX, emitted in the compute dtype ---
    map_h = _resize_h_nchw(map_, ho, compute_dtype)       # (B, K, Ho, Wm)
    feat_h = _resize_h_nchw(feature, ho, compute_dtype)   # (B, C, Ho, Wf)

    # --- row-group / tile geometry --------------------------------------------
    # rows per group: smallest row count whose flattened lane width is a
    # multiple of 128 for both the map and the feature widths (lane-dense,
    # 128-aligned in-kernel slices and block shapes).
    rg = math.lcm(128 // math.gcd(128, wm), 128 // math.gcd(128, wf))
    lanes_m, lanes_f, lanes_o = rg * wm, rg * wf, rg * wo
    n_groups = _cdiv(ho, rg)
    g_max = max(1, target_tile_lanes // lanes_f)
    n_tiles = _cdiv(n_groups, g_max)
    if b * n_tiles < 2 and n_groups >= 2:      # keep both v7x TensorCores busy
        n_tiles = 2
    groups_per_tile = _cdiv(n_groups, n_tiles)  # balanced: waste < one row-group
    n_tiles = _cdiv(n_groups, groups_per_tile)
    rows_per_tile = groups_per_tile * rg
    h_pad = n_tiles * rows_per_tile

    if h_pad != ho:                             # zero rows -> garbage, sliced off later
        pad = ((0, 0), (0, 0), (0, h_pad - ho), (0, 0))
        map_h = jnp.pad(map_h, pad)
        feat_h = jnp.pad(feat_h, pad)
    map_flat = map_h.reshape(b, k, h_pad * wm)
    feat_flat = feat_h.reshape(b, c, h_pad * wf)

    # --- block-diagonal width-interp matrices (one row-group), kept in f32 -----
    eye = np.eye(rg, dtype=np.float32)
    up_m = jnp.asarray(np.kron(eye, _interp_matrix_np(wo, wm).T))   # (rg*Wm, rg*Wo)
    up_f = jnp.asarray(np.kron(eye, _interp_matrix_np(wo, wf).T))   # (rg*Wf, rg*Wo)
    down = jnp.asarray(np.kron(eye, _interp_matrix_np(wf, wo).T))   # (rg*Wo, rg*Wf)

    # --- fold the 1x1 conv weight ----------------------------------------------
    #   out = (W_0 + sum_i W_{i+1}) @ f + sum_i seg_i * (W_{i+1} @ f) + bias
    blocks = [conv_w[:, i * c:(i + 1) * c] for i in range(num_classes + 1)]
    w_fold = blocks[0]
    for wb in blocks[1:]:
        w_fold = w_fold + wb
    w_stack = jnp.concatenate([w_fold] + blocks[1:], axis=0).astype(compute_dtype)
    bias = conv_b.reshape(c, 1).astype(jnp.float32)

    kernel = functools.partial(_fbem_kernel, num_classes, c, groups_per_tile,
                               lanes_m, lanes_f)
    tile_m = rows_per_tile * wm
    tile_f = rows_per_tile * wf
    out_flat = pl.pallas_call(
        kernel,
        out_shape=jax.ShapeDtypeStruct((b, c, h_pad * wf), compute_dtype),
        grid_spec=pltpu.PrefetchScalarGridSpec(
            num_scalar_prefetch=0,
            grid=(b, n_tiles),
            in_specs=[
                pl.BlockSpec((None, k, tile_m), lambda bi, ti: (bi, 0, ti)),
                pl.BlockSpec((None, c, tile_f), lambda bi, ti: (bi, 0, ti)),
                # Constant index maps: weight / bias / interp matrices are DMA'd
                # once and stay VMEM-resident across the whole grid.
                pl.BlockSpec(((num_classes + 1) * c, c), lambda bi, ti: (0, 0)),
                pl.BlockSpec((c, 1), lambda bi, ti: (0, 0)),
                pl.BlockSpec((lanes_m, lanes_o), lambda bi, ti: (0, 0)),
                pl.BlockSpec((lanes_f, lanes_o), lambda bi, ti: (0, 0)),
                pl.BlockSpec((lanes_o, lanes_f), lambda bi, ti: (0, 0)),
            ],
            out_specs=pl.BlockSpec((None, c, tile_f), lambda bi, ti: (bi, 0, ti)),
        ),
        compiler_params=pltpu.CompilerParams(
            dimension_semantics=("parallel", "parallel"),
        ),
    )(map_flat, feat_flat, w_stack, bias, up_m, up_f, down)

    # --- drop pad rows, H-axis downsample back to the original feature height ---
    fused = out_flat[:, :, :ho * wf].reshape(b, c, ho, wf)
    mh_down = jnp.asarray(_interp_matrix_np(hf, ho))
    out = jnp.einsum("oh,bchw->bcow", mh_down, fused.astype(jnp.float32))
    return out.astype(jnp.float32)


# ----------------------------------------------------------------------------
# Pure-JAX reference (mirrors the PyTorch forward) for validation.
# ----------------------------------------------------------------------------
def fbem_v6_reference(map_, feature, size, conv_w, conv_b, num_classes):
    _, c, hf, wf = feature.shape
    map_up = bilinear_resize_nchw(map_, size[0], size[1])
    feat_up = bilinear_resize_nchw(feature, size[0], size[1])
    seg = jax.nn.softmax(map_up, axis=1)
    feats = [feat_up]
    for i in range(num_classes):
        feats.append(seg[:, i:i + 1] * feat_up + feat_up)
    cat = jnp.concatenate(feats, axis=1)
    fused = jnp.einsum("oc,bchw->bohw", conv_w, cat) + conv_b[None, :, None, None]
    return bilinear_resize_nchw(fused, hf, wf)


if __name__ == "__main__":
    B, C, K = 2, 8, 3          # batch, channel, num_classes
    HF, WF = 8, 8              # original feature spatial size
    HM, WM = 8, 8              # map spatial size
    SIZE = (16, 16)            # interpolation target

    key = jax.random.PRNGKey(0)
    k1, k2, k3, k4 = jax.random.split(key, 4)
    map_in = jax.random.normal(k1, (B, K, HM, WM), dtype=jnp.float32)
    feat_in = jax.random.normal(k2, (B, C, HF, WF), dtype=jnp.float32)
    # Conv2d((K+1)*C, C, 1): weight (C, (K+1)*C, 1, 1) -> squeeze to (C, (K+1)*C)
    conv_w = 0.05 * jax.random.normal(k3, (C, (K + 1) * C), dtype=jnp.float32)
    conv_b = 0.01 * jax.random.normal(k4, (C,), dtype=jnp.float32)

    ref = fbem_v6_reference(map_in, feat_in, SIZE, conv_w, conv_b, K)

    # f32 path: tight check (exact softmax divide; all accumulation in f32).
    fwd_f32 = jax.jit(functools.partial(
        fbem_v6_forward, size=SIZE, num_classes=K, compute_dtype=jnp.float32))
    out_f32 = jax.block_until_ready(fwd_f32(map_in, feat_in,
                                            conv_w=conv_w, conv_b=conv_b))
    assert out_f32.shape == (B, C, HF, WF), out_f32.shape
    assert jnp.allclose(out_f32, ref, atol=2e-4, rtol=2e-4), (
        float(jnp.max(jnp.abs(out_f32 - ref)))
    )

    # bf16 production path (bf16 HBM traffic in AND out; f32 accumulation).
    fwd_bf16 = jax.jit(functools.partial(
        fbem_v6_forward, size=SIZE, num_classes=K, compute_dtype=jnp.bfloat16))
    out_bf16 = jax.block_until_ready(fwd_bf16(map_in, feat_in,
                                              conv_w=conv_w, conv_b=conv_b))
    assert out_bf16.shape == (B, C, HF, WF), out_bf16.shape
    assert jnp.allclose(out_bf16, ref, atol=2e-2, rtol=2e-2), (
        float(jnp.max(jnp.abs(out_bf16 - ref)))
    )

    print("KERNEL_OK")
</pallas_src>

<mosaic_0001>
module attributes {stable_mosaic.version = 11 : i64} {
  func.func @_fbem_kernel(%arg0: i32, %arg1: i32, %arg2: memref<1x3x128xf32, #tpu.memory_space<vmem>>, %arg3: memref<1x8x128xf32, #tpu.memory_space<vmem>>, %arg4: memref<32x8xf32, #tpu.memory_space<vmem>>, %arg5: memref<8x1xf32, #tpu.memory_space<vmem>>, %arg6: memref<128x256xf32, #tpu.memory_space<vmem>>, %arg7: memref<128x256xf32, #tpu.memory_space<vmem>>, %arg8: memref<256x128xf32, #tpu.memory_space<vmem>>, %arg9: memref<1x8x128xf32, #tpu.memory_space<vmem>>) attributes {dimension_semantics = [#tpu.dimension_semantics<parallel>, #tpu.dimension_semantics<parallel>], iteration_bounds = array<i64: 2, 1>, scalar_prefetch = 0 : i64, scratch_operands = 0 : i64, tpu.core_type = #tpu.core_type<tc>, window_params = [{transform_indices = @transform_0, window_bounds = array<i64: 1, 3, 128>}, {transform_indices = @transform_1, window_bounds = array<i64: 1, 8, 128>}, {pipeline_mode = #tpu.pipeline_mode<synchronous>, transform_indices = @transform_2, window_bounds = array<i64: 32, 8>}, {pipeline_mode = #tpu.pipeline_mode<synchronous>, transform_indices = @transform_3, window_bounds = array<i64: 8, 1>}, {pipeline_mode = #tpu.pipeline_mode<synchronous>, transform_indices = @transform_4, window_bounds = array<i64: 128, 256>}, {pipeline_mode = #tpu.pipeline_mode<synchronous>, transform_indices = @transform_5, window_bounds = array<i64: 128, 256>}, {pipeline_mode = #tpu.pipeline_mode<synchronous>, transform_indices = @transform_6, window_bounds = array<i64: 256, 128>}, {transform_indices = @transform_7, window_bounds = array<i64: 1, 8, 128>}]} {
    %c0 = arith.constant 0 : index
    %c0_0 = arith.constant 0 : index
    %0 = vector.load %arg6[%c0, %c0_0] : memref<128x256xf32, #tpu.memory_space<vmem>>, vector<128x256xf32>
    %c0_1 = arith.constant 0 : index
    %c0_2 = arith.constant 0 : index
    %1 = vector.load %arg7[%c0_1, %c0_2] : memref<128x256xf32, #tpu.memory_space<vmem>>, vector<128x256xf32>
    %c0_3 = arith.constant 0 : index
    %c0_4 = arith.constant 0 : index
    %2 = vector.load %arg8[%c0_3, %c0_4] : memref<256x128xf32, #tpu.memory_space<vmem>>, vector<256x128xf32>
    %c0_5 = arith.constant 0 : index
    %c0_6 = arith.constant 0 : index
    %3 = vector.load %arg4[%c0_5, %c0_6] : memref<32x8xf32, #tpu.memory_space<vmem>>, vector<32x8xf32>
    %c0_7 = arith.constant 0 : index
    %c0_8 = arith.constant 0 : index
    %4 = vector.load %arg5[%c0_7, %c0_8] : memref<8x1xf32, #tpu.memory_space<vmem>>, vector<8x1xf32>
    %c0_9 = arith.constant 0 : index
    %c0_10 = arith.constant 0 : index
    %c0_11 = arith.constant 0 : index
    %5 = vector.load %arg2[%c0_9, %c0_10, %c0_11] : memref<1x3x128xf32, #tpu.memory_space<vmem>>, vector<1x3x128xf32>
    %6 = vector.shape_cast %5 : vector<1x3x128xf32> to vector<3x128xf32>
    %cst = arith.constant dense<0.000000e+00> : vector<3x256xf32>
    %7 = tpu.matmul %6, %0, %cst {dimension_numbers = #tpu.dot_dimension_numbers<[1], [0], [0], [1], [0, 0, 1, 1], [], []>} : vector<3x128xf32>, vector<128x256xf32>, vector<3x256xf32> -> vector<3x256xf32>
    %cst_12 = arith.constant dense<0xFF800000> : vector<256xf32>
    %8 = vector.multi_reduction <maximumf>, %7, %cst_12 [0] : vector<3x256xf32> to vector<256xf32>
    %9 = vector.shape_cast %8 : vector<256xf32> to vector<1x256xf32>
    %10 = vector.broadcast %9 : vector<1x256xf32> to vector<3x256xf32>
    %11 = arith.subf %7, %10 : vector<3x256xf32>
    %12 = math.exp %11 : vector<3x256xf32>
    %cst_13 = arith.constant dense<0.000000e+00> : vector<256xf32>
    %13 = vector.multi_reduction <add>, %12, %cst_13 [0] : vector<3x256xf32> to vector<256xf32>
    %14 = vector.shape_cast %13 : vector<256xf32> to vector<1x256xf32>
    %15 = vector.broadcast %14 : vector<1x256xf32> to vector<3x256xf32>
    %16 = arith.divf %12, %15 : vector<3x256xf32>
    %c0_14 = arith.constant 0 : index
    %c0_15 = arith.constant 0 : index
    %c0_16 = arith.constant 0 : index
    %17 = vector.load %arg3[%c0_14, %c0_15, %c0_16] : memref<1x8x128xf32, #tpu.memory_space<vmem>>, vector<1x8x128xf32>
    %18 = vector.shape_cast %17 : vector<1x8x128xf32> to vector<8x128xf32>
    %cst_17 = arith.constant dense<0.000000e+00> : vector<32x128xf32>
    %19 = tpu.matmul %3, %18, %cst_17 {dimension_numbers = #tpu.dot_dimension_numbers<[1], [0], [0], [1], [0, 0, 1, 1], [], []>} : vector<32x8xf32>, vector<8x128xf32>, vector<32x128xf32> -> vector<32x128xf32>
    %cst_18 = arith.constant dense<0.000000e+00> : vector<32x256xf32>
    %20 = tpu.matmul %19, %1, %cst_18 {dimension_numbers = #tpu.dot_dimension_numbers<[1], [0], [0], [1], [0, 0, 1, 1], [], []>} : vector<32x128xf32>, vector<128x256xf32>, vector<32x256xf32> -> vector<32x256xf32>
    %21 = vector.extract_strided_slice %20 {offsets = [0, 0], sizes = [8, 256], strides = [1, 1]} : vector<32x256xf32> to vector<8x256xf32>
    %22 = vector.extract_strided_slice %16 {offsets = [0, 0], sizes = [1, 256], strides = [1, 1]} : vector<3x256xf32> to vector<1x256xf32>
    %23 = vector.extract_strided_slice %20 {offsets = [8, 0], sizes = [8, 256], strides = [1, 1]} : vector<32x256xf32> to vector<8x256xf32>
    %24 = vector.broadcast %22 : vector<1x256xf32> to vector<8x256xf32>
    %25 = arith.mulf %24, %23 : vector<8x256xf32>
    %26 = arith.addf %21, %25 : vector<8x256xf32>
    %27 = vector.extract_strided_slice %16 {offsets = [1, 0], sizes = [1, 256], strides = [1, 1]} : vector<3x256xf32> to vector<1x256xf32>
    %28 = vector.extract_strided_slice %20 {offsets = [16, 0], sizes = [8, 256], strides = [1, 1]} : vector<32x256xf32> to vector<8x256xf32>
    %29 = vector.broadcast %27 : vector<1x256xf32> to vector<8x256xf32>
    %30 = arith.mulf %29, %28 : vector<8x256xf32>
    %31 = arith.addf %26, %30 : vector<8x256xf32>
    %32 = vector.extract_strided_slice %16 {offsets = [2, 0], sizes = [1, 256], strides = [1, 1]} : vector<3x256xf32> to vector<1x256xf32>
    %33 = vector.extract_strided_slice %20 {offsets = [24, 0], sizes = [8, 256], strides = [1, 1]} : vector<32x256xf32> to vector<8x256xf32>
    %34 = vector.broadcast %32 : vector<1x256xf32> to vector<8x256xf32>
    %35 = arith.mulf %34, %33 : vector<8x256xf32>
    %36 = arith.addf %31, %35 : vector<8x256xf32>
    %cst_19 = arith.constant dense<0.000000e+00> : vector<8x128xf32>
    %37 = tpu.matmul %36, %2, %cst_19 {dimension_numbers = #tpu.dot_dimension_numbers<[1], [0], [0], [1], [0, 0, 1, 1], [], []>} : vector<8x256xf32>, vector<256x128xf32>, vector<8x128xf32> -> vector<8x128xf32>
    %38 = vector.broadcast %4 : vector<8x1xf32> to vector<8x128xf32>
    %39 = arith.addf %37, %38 : vector<8x128xf32>
    %c0_20 = arith.constant 0 : index
    %c0_21 = arith.constant 0 : index
    %c0_22 = arith.constant 0 : index
    %40 = vector.load %arg9[%c0_20, %c0_21, %c0_22] : memref<1x8x128xf32, #tpu.memory_space<vmem>>, vector<1x8x128xf32>
    %41 = vector.shape_cast %40 : vector<1x8x128xf32> to vector<8x128xf32>
    %42 = vector.shape_cast %39 : vector<8x128xf32> to vector<1x8x128xf32>
    tpu.vector_store %arg9[%c0_20, %c0_21, %c0_22], %42 {strides = array<i32>} : memref<1x8x128xf32, #tpu.memory_space<vmem>>, vector<1x8x128xf32>,
    return
  }
  func.func @transform_0(%arg0: i32, %arg1: i32) -> (i32, i32, i32) {
    %c0_i32 = arith.constant 0 : i32
    %c0_i32_0 = arith.constant 0 : i32
    return %arg0, %c0_i32, %arg1 : i32, i32, i32
  }
  func.func @transform_1(%arg0: i32, %arg1: i32) -> (i32, i32, i32) {
    %c0_i32 = arith.constant 0 : i32
    %c0_i32_0 = arith.constant 0 : i32
    return %arg0, %c0_i32, %arg1 : i32, i32, i32
  }
  func.func @transform_2(%arg0: i32, %arg1: i32) -> (i32, i32) {
    %c0_i32 = arith.constant 0 : i32
    %c0_i32_0 = arith.constant 0 : i32
    %c0_i32_1 = arith.constant 0 : i32
    return %c0_i32, %c0_i32_0 : i32, i32
  }
  func.func @transform_3(%arg0: i32, %arg1: i32) -> (i32, i32) {
    %c0_i32 = arith.constant 0 : i32
    %c0_i32_0 = arith.constant 0 : i32
    %c0_i32_1 = arith.constant 0 : i32
    return %c0_i32, %c0_i32_0 : i32, i32
  }
  func.func @transform_4(%arg0: i32, %arg1: i32) -> (i32, i32) {
    %c0_i32 = arith.constant 0 : i32
    %c0_i32_0 = arith.constant 0 : i32
    %c0_i32_1 = arith.constant 0 : i32
    return %c0_i32, %c0_i32_0 : i32, i32
  }
  func.func @transform_5(%arg0: i32, %arg1: i32) -> (i32, i32) {
    %c0_i32 = arith.constant 0 : i32
    %c0_i32_0 = arith.constant 0 : i32
    %c0_i32_1 = arith.constant 0 : i32
    return %c0_i32, %c0_i32_0 : i32, i32
  }
  func.func @transform_6(%arg0: i32, %arg1: i32) -> (i32, i32) {
    %c0_i32 = arith.constant 0 : i32
    %c0_i32_0 = arith.constant 0 : i32
    %c0_i32_1 = arith.constant 0 : i32
    return %c0_i32, %c0_i32_0 : i32, i32
  }
  func.func @transform_7(%arg0: i32, %arg1: i32) -> (i32, i32, i32) {
    %c0_i32 = arith.constant 0 : i32
    %c0_i32_0 = arith.constant 0 : i32
    return %arg0, %c0_i32, %arg1 : i32, i32, i32
  }
}

</mosaic_0001>

<bundles_post_ra>
// kernel: fbem_v6_forward.1
= control target key start
LH: loop header
LB: loop body
LE: loop exit
PB: predicated region body
PF: predicated region fallthrough
CT: control target
= control target key end

     0   :  { %s907_s24 = smov 0   ;;  %s909_s25 = smov 0   ;;  %s1284_s0 = inlined_call_operand.vmem [shape: f32[2,3,128], index: 0, kind: input, shape index: {}]   ;;  %s1285_s1 = inlined_call_operand.vmem [shape: f32[2,8,128], index: 1, kind: input, shape index: {}]   ;;  %s1286_s2 = inlined_call_operand.vmem [shape: f32[32,8], index: 2, kind: input, shape index: {}]   ;;  %s1287_s3 = inlined_call_operand.vmem [shape: f32[8,1], index: 3, kind: input, shape index: {}]   ;;  %s1288_s4 = inlined_call_operand.vmem [shape: f32[128,256], index: 4, kind: input, shape index: {}, may-alias: {4,5}]   ;;  %s1289_s5 = inlined_call_operand.vmem [shape: f32[128,256], index: 5, kind: input, shape index: {}, may-alias: {4,5}]   ;;  %s1290_s6 = inlined_call_operand.vmem [shape: f32[256,128], index: 6, kind: input, shape index: {}]   ;;  %s1291_s7 = inlined_call_operand.vmem [shape: f32[2,8,128], index: 7, kind: output, shape index: {}]  }
   0x1   :  { %s911_s26 = smov 0  }
   0x2 LB: > { %s29_s27 = sadd.s32 1, %s860_s25  ;;  %p798_p0 = scmp.ge.s32.totalorder %s864_s26, 1  ;;  %s864_s26 = sphi %s911_s26, %s17_s26   ;;  %s860_s25 = sphi %s909_s25, %s1293_s25   ;;  %s856_s24 = sphi %s907_s24, %s1292_s24  }
   0x3   : > { %p31_p1 = scmp.ge.s32.totalorder %s29_s27, 2  ;;  %p269_p2 = scmp.lt.s32.totalorder %s864_s26, 3 }
   0x5   : > { %s1295_s27 = smov (%p31_p1, %s29_s27), 0  ;;  %p270_p3 = pnand %p798_p0, %p269_p2 }
   0x6   : > { %p312_p4 = scmp.lt.s32.totalorder (!%p270_p3), %s856_s24, 1 }
   0x7   : > { %273 = sbr.rel (%p270_p3) target bundleno = 441 (0x1b9), region = 48 }
   0xc   : > { %v363_v0 = vld [vmem:[%s1288_s4 + $0xf0] sm:$0xff]  ;;  %v361_v1 = vld [vmem:[%s1288_s4 + $0xe0] sm:$0xff]  ;;  %s1297_s24 = smov (!%p312_p4, %s856_s24), 1  ;;  %v364_v2 = vld [vmem:[%s1288_s4 + $0xf8] sm:$0xff]  ;;  %vm541_vm0 = vcmask 64512   ;;  %vm475_vm1 = vcmask 1042432  }
   0xd   : > { %435 = vmatpush.msra.mxu0 %v363_v0  ;;  %v362_v3 = vld [vmem:[%s1288_s4 + $0xe8] sm:$0xff]  ;;  %455 = vmatpush.msra.mxu1 %v364_v2  ;;  %v359_v4 = vld [vmem:[%s1288_s4 + $0xd0] sm:$0xff]  ;;  %s800_s15 = sshll.u32 %s1297_s24, 3  ;;  %v360_v5 = vld [vmem:[%s1288_s4 + $0xd8] sm:$0xff]  ;;  %s799_s19 = sshll.u32 %s1297_s24, 2 }
   0xe   : > { %s325_s20 = scalar_lea.vmem %s1285_s1, %s800_s15  ;;  %v429_v6 = vld [vmem:[%s1286_s2] sm:$0xff]  ;;  %v358_v9 = vld [vmem:[%s1288_s4 + $0xc8] sm:$0xff]  ;;  %v355_v10 = vld [vmem:[%s1288_s4 + $0xb0] sm:$0xff]  ;;  %s318_s16 = scalar_lea.vmem %s1284_s0, %s799_s19 }
   0xf   : > { %436 = vmatpush.msra.mxu0 %v361_v1  ;;  %456 = vmatpush.msra.mxu1 %v362_v3  ;;  %v357_v7 = vld [vmem:[%s1288_s4 + $0xc0] sm:$0xff]  ;;  %v356_v11 = vld [vmem:[%s1288_s4 + $0xb8] sm:$0xff]  ;;  %v354_v13 = vld [vmem:[%s1288_s4 + $0xa8] sm:$0xff] }
  0x10   : > { %v540_v8 = vld [vmem:[%s325_s20] sm:$0xff]  ;;  %v351_v14 = vld [vmem:[%s1288_s4 + $0x90] sm:$0xff]  ;;  %v430_v15 = vld [vmem:[%s1286_s2 + $0x8] sm:$0xff]  ;;  %s332_s20 = scalar_lea.vmem %s1291_s7, %s800_s15 }
  0x11   : > { %437 = vmatpush.msra.mxu0 %v359_v4  ;;  %569 = vmatpush.msra.mxu2 %v540_v8  ;;  %v353_v12 = vld [vmem:[%s1288_s4 + $0xa0] sm:$0xff]  ;;  %v352_v16 = vld [vmem:[%s1288_s4 + $0x98] sm:$0xff]  ;;  %v395_v17 = vld [vmem:[%s1289_s5 + $0xf0] sm:$0xff] }
  0x12   : > { %457 = vmatpush.msra.mxu1 %v360_v5  ;;  %802 = vmatmul.msk.f32.vlgmr.msra.gmra.mxu2 %vm541_vm0, %v429_v6  ;;  %v349_v18 = vld [vmem:[%s1288_s4 + $0x80] sm:$0xff]  ;;  %v396_v19 = vld [vmem:[%s1289_s5 + $0xf8] sm:$0xff]  ;;  %v350_v21 = vld [vmem:[%s1288_s4 + $0x88] sm:$0xff] }
  0x13   : > { %438 = vmatpush.msra.mxu0 %v357_v7  ;;  %583 = vmatpush.msra.mxu3 %v395_v17  ;;  %v393_v20 = vld [vmem:[%s1289_s5 + $0xe0] sm:$0xff]  ;;  %v394_v22 = vld [vmem:[%s1289_s5 + $0xe8] sm:$0xff]  ;;  %v347_v23 = vld [vmem:[%s1288_s4 + $0x70] sm:$0xff] }
  0x14   : > { %458 = vmatpush.msra.mxu1 %v358_v9  ;;  %612 = vmatpush.msrb.mxu2 %v396_v19  ;;  %v391_v24 = vld [vmem:[%s1289_s5 + $0xd0] sm:$0xff]  ;;  %v348_v25 = vld [vmem:[%s1288_s4 + $0x78] sm:$0xff]  ;;  %v345_v27 = vld [vmem:[%s1288_s4 + $0x60] sm:$0xff] }
  0x15   : > { %439 = vmatpush.msra.mxu0 %v355_v10  ;;  %584 = vmatpush.msra.mxu3 %v393_v20  ;;  %v392_v26 = vld [vmem:[%s1289_s5 + $0xd8] sm:$0xff]  ;;  %v389_v28 = vld [vmem:[%s1289_s5 + $0xc0] sm:$0xff]  ;;  %v346_v29 = vld [vmem:[%s1288_s4 + $0x68] sm:$0xff] }
  0x16   : > { %459 = vmatpush.msra.mxu1 %v356_v11  ;;  %613 = vmatpush.msrb.mxu2 %v394_v22  ;;  %v390_v30 = vld [vmem:[%s1289_s5 + $0xc8] sm:$0xff]  ;;  %v343_v31 = vld [vmem:[%s1288_s4 + $0x50] sm:$0xff]  ;;  %v344_v33 = vld [vmem:[%s1288_s4 + $0x58] sm:$0xff] }
  0x17   : > { %440 = vmatpush.msra.mxu0 %v353_v12  ;;  %585 = vmatpush.msra.mxu3 %v391_v24  ;;  %v387_v32 = vld [vmem:[%s1289_s5 + $0xb0] sm:$0xff]  ;;  %v388_v34 = vld [vmem:[%s1289_s5 + $0xb8] sm:$0xff]  ;;  %v341_v36 = vld [vmem:[%s1288_s4 + $0x40] sm:$0xff] }
  0x18   : > { %460 = vmatpush.msra.mxu1 %v354_v13  ;;  %614 = vmatpush.msrb.mxu2 %v392_v26  ;;  %v431_v35 = vld [vmem:[%s1286_s2 + $0x10] sm:$0xff]  ;;  %v342_v37 = vld [vmem:[%s1288_s4 + $0x48] sm:$0xff]  ;;  %v385_v38 = vld [vmem:[%s1289_s5 + $0xa0] sm:$0xff] }
  0x19   : > { %441 = vmatpush.msra.mxu0 %v351_v14  ;;  %586 = vmatpush.msra.mxu3 %v389_v28  ;;  %v339_v39 = vld [vmem:[%s1288_s4 + $0x30] sm:$0xff]  ;;  %v386_v40 = vld [vmem:[%s1289_s5 + $0xa8] sm:$0xff]  ;;  %v340_v41 = vld [vmem:[%s1288_s4 + $0x38] sm:$0xff] }
  0x1a   : > { %461 = vmatpush.msra.mxu1 %v352_v16  ;;  %803 = vmatmul.msk.f32.gmra.mxu2 %vm541_vm0, %v430_v15  ;;  %v383_v42 = vld [vmem:[%s1289_s5 + $0x90] sm:$0xff]  ;;  %v337_v43 = vld [vmem:[%s1288_s4 + $0x20] sm:$0xff]  ;;  %v384_v44 = vld [vmem:[%s1289_s5 + $0x98] sm:$0xff] }
  0x1b   : > { %442 = vmatpush.msra.mxu0 %v349_v18  ;;  %615 = vmatpush.msrb.mxu2 %v390_v30  ;;  %v338_v45 = vld [vmem:[%s1288_s4 + $0x28] sm:$0xff]  ;;  %v381_v46 = vld [vmem:[%s1289_s5 + $0x80] sm:$0xff]  ;;  %v335_v47 = vld [vmem:[%s1288_s4 + $0x10] sm:$0xff] }
  0x1c   : > { %462 = vmatpush.msra.mxu1 %v350_v21  ;;  %587 = vmatpush.msra.mxu3 %v387_v32  ;;  %v382_v48 = vld [vmem:[%s1289_s5 + $0x88] sm:$0xff]  ;;  %v336_v49 = vld [vmem:[%s1288_s4 + $0x18] sm:$0xff]  ;;  %v379_v50 = vld [vmem:[%s1289_s5 + $0x70] sm:$0xff] }
  0x1d   : > { %443 = vmatpush.msra.mxu0 %v347_v23  ;;  %616 = vmatpush.msrb.mxu2 %v388_v34  ;;  %v432_v51 = vld [vmem:[%s1286_s2 + $0x18] sm:$0xff]  ;;  %v333_v52 = vld [vmem:[%s1288_s4] sm:$0xff]  ;;  %v334_v54 = vld [vmem:[%s1288_s4 + $0x8] sm:$0xff] }
  0x1e   : > { %463 = vmatpush.msra.mxu1 %v348_v25  ;;  %588 = vmatpush.msra.mxu3 %v385_v38  ;;  %v434_v53 = vld [vmem:[%s318_s16] sm:$0x7]  ;;  %v380_v55 = vld [vmem:[%s1289_s5 + $0x78] sm:$0xff]  ;;  %v378_v57 = vld [vmem:[%s1289_s5 + $0x68] sm:$0xff] }
  0x1f   : > { %444 = vmatpush.msra.mxu0 %v345_v27  ;;  %617 = vmatpush.msrb.mxu2 %v386_v40  ;;  %v377_v56 = vld [vmem:[%s1289_s5 + $0x60] sm:$0xff]  ;;  %v375_v58 = vld [vmem:[%s1289_s5 + $0x50] sm:$0xff]  ;;  %v376_v59 = vld [vmem:[%s1289_s5 + $0x58] sm:$0xff] }
  0x20   : > { %464 = vmatpush.msra.mxu1 %v346_v29  ;;  %589 = vmatpush.msra.mxu3 %v383_v42  ;;  %v373_v60 = vld [vmem:[%s1289_s5 + $0x40] sm:$0xff]  ;;  %v374_v61 = vld [vmem:[%s1289_s5 + $0x48] sm:$0xff]  ;;  %v371_v62 = vld [vmem:[%s1289_s5 + $0x30] sm:$0xff] }
  0x21   : > { %445 = vmatpush.msra.mxu0 %v343_v31  ;;  %618 = vmatpush.msrb.mxu2 %v384_v44  ;;  %v372_v63 = vld [vmem:[%s1289_s5 + $0x38] sm:$0xff]  ;;  %v369_v0 = vld [vmem:[%s1289_s5 + $0x20] sm:$0xff]  ;;  %v370_v1 = vld [vmem:[%s1289_s5 + $0x28] sm:$0xff] }
  0x22   : > { %465 = vmatpush.msra.mxu1 %v344_v33  ;;  %804 = vmatmul.msk.f32.gmra.mxu2 %vm541_vm0, %v431_v35  ;;  %v367_v2 = vld [vmem:[%s1289_s5 + $0x10] sm:$0xff]  ;;  %v368_v3 = vld [vmem:[%s1289_s5 + $0x18] sm:$0xff]  ;;  %v365_v4 = vld [vmem:[%s1289_s5] sm:$0xff] }
  0x23   : > { %446 = vmatpush.msra.mxu0 %v341_v36  ;;  %590 = vmatpush.msra.mxu3 %v381_v46  ;;  %v366_v5 = vld [vmem:[%s1289_s5 + $0x8] sm:$0xff]  ;;  %v412_v10 = vld [vmem:[%s1290_s6 + $0x78] sm:$0xff]  ;;  %v411_v42 = vld [vmem:[%s1290_s6 + $0x70] sm:$0xff] }
  0x24   : > { %466 = vmatpush.msra.mxu1 %v342_v37  ;;  %619 = vmatpush.msrb.mxu2 %v382_v48  ;;  %v428_v11 = vld [vmem:[%s1290_s6 + $0xf8] sm:$0xff]  ;;  %v410_v44 = vld [vmem:[%s1290_s6 + $0x68] sm:$0xff]  ;;  %v425_v48 = vld [vmem:[%s1290_s6 + $0xe0] sm:$0xff] }
  0x25   : > { %447 = vmatpush.msra.mxu0 %v339_v39  ;;  %591 = vmatpush.msra.mxu3 %v379_v50  ;;  %v408_v50 = vld [vmem:[%s1290_s6 + $0x58] sm:$0xff] }
  0x26   : > { %467 = vmatpush.msra.mxu1 %v340_v41  ;;  %620 = vmatpush.msrb.mxu2 %v380_v55  ;;  %v423_v55 = vld [vmem:[%s1290_s6 + $0xd0] sm:$0xff] }
  0x27   : > { %448 = vmatpush.msra.mxu0 %v337_v43  ;;  %592 = vmatpush.msra.mxu3 %v377_v56  ;;  %v427_v43 = vld [vmem:[%s1290_s6 + $0xf0] sm:$0xff] }
  0x28   : > { %468 = vmatpush.msra.mxu1 %v338_v45  ;;  %621 = vmatpush.msrb.mxu2 %v378_v57  ;;  %v426_v45 = vld [vmem:[%s1290_s6 + $0xe8] sm:$0xff] }
  0x29   : > { %449 = vmatpush.msra.mxu0 %v335_v47  ;;  %593 = vmatpush.msra.mxu3 %v375_v58  ;;  %v409_v47 = vld [vmem:[%s1290_s6 + $0x60] sm:$0xff]  ;;  %v406_v57 = vld [vmem:[%s1290_s6 + $0x48] sm:$0xff] }
  0x2a   : > { %469 = vmatpush.msra.mxu1 %v336_v49  ;;  %805 = vmatmul.msk.f32.gmra.mxu2 %vm541_vm0, %v432_v51  ;;  %v424_v51 = vld [vmem:[%s1290_s6 + $0xd8] sm:$0xff]  ;;  %v422_v58 = vld [vmem:[%s1290_s6 + $0xc8] sm:$0xff] }
  0x2b   : > { %450 = vmatpush.msra.mxu0 %v333_v52  ;;  %622 = vmatpush.msrb.mxu2 %v376_v59 }
  0x2c   : > { %451 = vmatmul.f32.vlgmr.msra.gmra.mxu0 %v434_v53  ;;  %470 = vmatpush.msra.mxu1 %v334_v54  ;;  %v407_v54 = vld [vmem:[%s1290_s6 + $0x50] sm:$0xff] }
  0x2d   : > { %471 = vmatmul.f32.vlgmr.msra.gmra.mxu1 %v434_v53  ;;  %594 = vmatpush.msra.mxu3 %v373_v60  ;;  %v405_v60 = vld [vmem:[%s1290_s6 + $0x40] sm:$0xff] }
  0x2e   : > { %623 = vmatpush.msrb.mxu2 %v374_v61  ;;  %664 = vmatpush.msrb.mxu0 %v412_v10  ;;  %v421_v61 = vld [vmem:[%s1290_s6 + $0xc0] sm:$0xff] }
  0x2f   : > { %595 = vmatpush.msra.mxu3 %v371_v62  ;;  %684 = vmatpush.msrb.mxu1 %v428_v11  ;;  %v404_v62 = vld [vmem:[%s1290_s6 + $0x38] sm:$0xff] }
  0x30   : > { %624 = vmatpush.msrb.mxu2 %v372_v63  ;;  %665 = vmatpush.msrb.mxu0 %v411_v42  ;;  %v420_v63 = vld [vmem:[%s1290_s6 + $0xb8] sm:$0xff] }
  0x31   : > { %596 = vmatpush.msra.mxu3 %v369_v0  ;;  %685 = vmatpush.msrb.mxu1 %v427_v43  ;;  %v403_v0 = vld [vmem:[%s1290_s6 + $0x30] sm:$0xff] }
  0x32   : > { %625 = vmatpush.msrb.mxu2 %v370_v1  ;;  %666 = vmatpush.msrb.mxu0 %v410_v44  ;;  %v419_v1 = vld [vmem:[%s1290_s6 + $0xb0] sm:$0xff] }
  0x33   : > { %597 = vmatpush.msra.mxu3 %v367_v2  ;;  %686 = vmatpush.msrb.mxu1 %v426_v45  ;;  %v402_v2 = vld [vmem:[%s1290_s6 + $0x28] sm:$0xff] }
  0x34   : > { %626 = vmatpush.msrb.mxu2 %v368_v3  ;;  %667 = vmatpush.msrb.mxu0 %v409_v47  ;;  %v418_v3 = vld [vmem:[%s1290_s6 + $0xa8] sm:$0xff] }
  0x35   : > { %598 = vmatpush.msra.mxu3 %v365_v4  ;;  %687 = vmatpush.msrb.mxu1 %v425_v48 }
  0x36   : > { %627 = vmatpush.msrb.mxu2 %v366_v5  ;;  %668 = vmatpush.msrb.mxu0 %v408_v50  ;;  %v401_v5 = vld [vmem:[%s1290_s6 + $0x20] sm:$0xff] }
  0x37   : > { %688 = vmatpush.msrb.mxu1 %v424_v51 }
  0x38   : > { %669 = vmatpush.msrb.mxu0 %v407_v54 }
  0x39   : > { %689 = vmatpush.msrb.mxu1 %v423_v55 }
  0x3a   : > { %670 = vmatpush.msrb.mxu0 %v406_v57 }
  0x3b   : > { %690 = vmatpush.msrb.mxu1 %v422_v58 }
  0x3c   : > { %671 = vmatpush.msrb.mxu0 %v405_v60 }
  0x3d   : > { %691 = vmatpush.msrb.mxu1 %v421_v61 }
  0x3e   : > { %672 = vmatpush.msrb.mxu0 %v404_v62 }
  0x3f   : > { %692 = vmatpush.msrb.mxu1 %v420_v63 }
  0x40   : > { %673 = vmatpush.msrb.mxu0 %v403_v0 }
  0x41   : > { %693 = vmatpush.msrb.mxu1 %v419_v1 }
  0x42   : > { %674 = vmatpush.msrb.mxu0 %v402_v2 }
  0x43   : > { %694 = vmatpush.msrb.mxu1 %v418_v3 }
  0x44   : > { %675 = vmatpush.msrb.mxu0 %v401_v5 }
  0x95   : > { %v571_v6 = vpop.f32.mrf.mxu2 }
  0x96   : > { %599 = vmatmul.f32.vlgmr.msra.gmra.mxu3 %v571_v6  ;;  %628 = vmatmul.f32.vlgmr.msrb.gmra.mxu2 %v571_v6  ;;  %v417_v6 = vld [vmem:[%s1290_s6 + $0xa0] sm:$0xff] }
  0x97   : > { %695 = vmatpush.msrb.mxu1 %v417_v6 }
  0x9d   : > { %v574_v7 = vpop.f32.mrf.mxu2 }
  0x9e   : > { %602 = vmatmul.f32.gmra.mxu3 %v574_v7  ;;  %631 = vmatmul.f32.gmra.mxu2 %v574_v7  ;;  %v400_v7 = vld [vmem:[%s1290_s6 + $0x18] sm:$0xff] }
  0x9f   : > { %676 = vmatpush.msrb.mxu0 %v400_v7 }
  0xa5   : > { %v577_v8 = vpop.f32.mrf.mxu2 }
  0xa6   : > { %605 = vmatmul.f32.gmra.mxu3 %v577_v8  ;;  %634 = vmatmul.f32.gmra.mxu2 %v577_v8 }
  0xa9   : > { %v452_v12 = vpop.f32.mrf.mxu0 }
  0xaa   : > { %v472_v13 = vpop.f32.mrf.mxu1  ;;  %v476_v14 = vsel %vm475_vm1, %v452_v12, -inf }
  0xab   : > { %v483_v15 = vsel %vm475_vm1, %v472_v13, -inf  ;;  %v477_v16 = vrot.slane %v476_v14, 4 }
  0xac   : > { %v484_v17 = vrot.slane %v483_v15, 4 }
  0xad   : > { %v580_v9 = vpop.f32.mrf.mxu2  ;;  %v478_v18 = vmax.f32 %v476_v14, %v477_v16  ;;  %v398_v14 = vld [vmem:[%s1290_s6 + $0x8] sm:$0xff] }
  0xae   : > { %608 = vmatmul.f32.gmra.mxu3 %v580_v9  ;;  %637 = vmatmul.f32.gmra.mxu2 %v580_v9  ;;  %v485_v19 = vmax.f32 %v483_v15, %v484_v17  ;;  %v416_v9 = vld [vmem:[%s1290_s6 + $0x98] sm:$0xff]  ;;  %v414_v15 = vld [vmem:[%s1290_s6 + $0x88] sm:$0xff] }
  0xaf   : > { %v479_v20 = vrot.slane %v478_v18, 2  ;;  %696 = vmatpush.msrb.mxu1 %v416_v9 }
  0xb0   : > { %v486_v21 = vrot.slane %v485_v19, 2 }
  0xb1   : > { %v480_v22 = vmax.f32 %v478_v18, %v479_v20  ;;  %v397_v18 = vld [vmem:[%s1290_s6] sm:$0xff] }
  0xb2   : > { %v487_v23 = vmax.f32 %v485_v19, %v486_v21  ;;  %v413_v19 = vld [vmem:[%s1290_s6 + $0x80] sm:$0xff]  ;;  %v866_v21 = vmov 0  }
  0xb3   : > { %v481_v24 = vrot.slane %v480_v22, 1  ;;  %v433_v20 = vld [vmem:[%s1287_s3] sm:$0xff]  ;;  %833 = vset.pattern.permute.xlu0 %v866_v21 }
  0xb4   : > { %v488_v25 = vrot.slane %v487_v23, 1  ;;  %661 = vperm.xlu0 %833, %v433_v20  }
  0xb5   : > { %v482_v26 = vmax.f32 %v480_v22, %v481_v24 }
  0xb6   : > { %v489_v27 = vmax.f32 %v487_v23, %v488_v25 }
  0xb7   : > { %v490_v28 = vsub.f32 %v452_v12, %v482_v26  ;;  %v399_v12 = vld [vmem:[%s1290_s6 + $0x10] sm:$0xff] }
  0xb8   : > { %v491_v29 = vsub.f32 %v472_v13, %v489_v27  ;;  %v415_v13 = vld [vmem:[%s1290_s6 + $0x90] sm:$0xff]  ;;  %677 = vmatpush.msrb.mxu0 %v399_v12 }
  0xb9   : > { %v492_v30 = vmul.f32 1.442695, %v490_v28  ;;  %697 = vmatpush.msrb.mxu1 %v415_v13 }
  0xba   : > { %v494_v31 = vmul.f32 1.442695, %v491_v29  ;;  %678 = vmatpush.msrb.mxu0 %v398_v14 }
  0xbb   : > { %834 = vpow2.f32 %v492_v30  ;;  %698 = vmatpush.msrb.mxu1 %v414_v15 }
  0xbc   : > { %836 = vpow2.f32 %v494_v31  ;;  %679 = vmatpush.msrb.mxu0 %v397_v18 }
  0xbd   : > { %699 = vmatpush.msrb.mxu1 %v413_v19 }
  0xc1   : > { %v1153_v32 = vpop.eup %834 }
  0xc2   : > { %v1155_v33 = vpop.eup %836  ;;  %v496_v34 = vsel %vm475_vm1, %v1153_v32, 0.0 }
  0xc3   : > { %v503_v35 = vsel %vm475_vm1, %v1155_v33, 0.0  ;;  %v497_v36 = vrot.slane %v496_v34, 4 }
  0xc4   : > { %v504_v37 = vrot.slane %v503_v35, 4 }
  0xc5   : > { %v498_v38 = vadd.f32 %v497_v36, %v496_v34 }
  0xc6   : > { %v505_v39 = vadd.f32 %v504_v37, %v503_v35 }
  0xc7   : > { %v499_v40 = vrot.slane %v498_v38, 2 }
  0xc8   : > { %v506_v41 = vrot.slane %v505_v39, 2 }
  0xc9   : > { %v500_v46 = vadd.f32 %v499_v40, %v498_v38 }
  0xca   : > { %v507_v49 = vadd.f32 %v506_v41, %v505_v39 }
  0xcb   : > { %v501_v52 = vrot.slane %v500_v46, 1 }
  0xcc   : > { %v508_v53 = vrot.slane %v507_v49, 1 }
  0xcd   : > { %v1191_v56 = vadd.f32 %v501_v52, %v500_v46 }
  0xce   : > { %v1199_v59 = vadd.f32 %v508_v53, %v507_v49 }
  0xcf   : > { %838 = vrcp.f32 %v1191_v56  ;;  %vm515_vm2 = vweird.f32 %v1191_v56  ;;  %v521_v26 = vand.u32 2147483648, %v1191_v56  ;;  %v519_v29 = vand.u32 2147483647, %v1191_v56 }
  0xd0   : > { %840 = vrcp.f32 %v1199_v59  ;;  %vm530_vm4 = vweird.f32 %v1199_v59  ;;  %v536_v27 = vand.u32 2147483648, %v1199_v59  ;;  %v534_v31 = vand.u32 2147483647, %v1199_v59 }
  0xd1   : > { %v522_v34 = vor.u32 1.1754944e-38, %v521_v26  ;;  %vm520_vm8 = vcmp.eq.f32.partialorder %v519_v29, 8.507059e+37 }
  0xd2   : > { %v537_v35 = vor.u32 1.1754944e-38, %v536_v27  ;;  %vm535_vm9 = vcmp.eq.f32.partialorder %v534_v31, 8.507059e+37 }
  0xd5   : > { %v839_v4 = vpop.eup %838 }
  0xd6   : > { %v841_v8 = vpop.eup %840  ;;  %v511_v10 = vmul.f32 %v839_v4, %v1191_v56  ;;  %vm516_vm3 = vweird.f32 %v839_v4 }
  0xd7   : > { %v526_v11 = vmul.f32 %v841_v8, %v1199_v59  ;;  %vm531_vm5 = vweird.f32 %v841_v8  ;;  %vm517_vm6 = vmor %vm515_vm2, %vm516_vm3 }
  0xd8   : > { %v512_v16 = vsub.f32 1.0, %v511_v10  ;;  %vm532_vm7 = vmor %vm530_vm4, %vm531_vm5 }
  0xd9   : > { %v527_v17 = vsub.f32 1.0, %v526_v11 }
  0xda   : > { %v513_v22 = vmul.f32 %v839_v4, %v512_v16 }
  0xdb   : > { %v528_v23 = vmul.f32 %v841_v8, %v527_v17 }
  0xdc   : > { %v514_v28 = vadd.f32 %v839_v4, %v513_v22 }
  0xdd   : > { %v529_v30 = vadd.f32 %v841_v8, %v528_v23 }
  0xde   : > { %v518_v36 = vsel %vm517_vm6, %v839_v4, %v514_v28 }
  0xdf   : > { %v533_v37 = vsel %vm532_vm7, %v841_v8, %v529_v30  ;;  %v523_v40 = vsel %vm520_vm8, %v522_v34, %v518_v36 }
  0xe0   : > { %v538_v41 = vsel %vm535_vm9, %v537_v35, %v533_v37  ;;  %v524_v42 = vmul.f32 %v1153_v32, %v523_v40 }
  0xe1   : > { %v539_v43 = vmul.f32 %v1155_v33, %v538_v41 }
  0xe2   : > { %v641_v46 = vperm.slane %v524_v42, 0  ;;  %v647_v50 = vperm.slane %v524_v42, 1  ;;  %v653_v56 = vperm.slane %v524_v42, 2 }
  0xe3   : > { %v642_v47 = vperm.slane %v539_v43, 0  ;;  %v648_v51 = vperm.slane %v539_v43, 1  ;;  %v654_v57 = vperm.slane %v539_v43, 2 }
 0x119   : > { %v600_v24 = vpop.f32.mrf.mxu3  ;;  %v629_v25 = vpop.f32.mrf.mxu2 }
 0x121   : > { %v603_v38 = vpop.f32.mrf.mxu3  ;;  %v632_v39 = vpop.f32.mrf.mxu2 }
 0x122   : > { %v643_v48 = vmul.f32 %v641_v46, %v603_v38  ;;  %v644_v49 = vmul.f32 %v642_v47, %v632_v39 }
 0x124   : > { %v645_v54 = vadd.f32 %v643_v48, %v600_v24  ;;  %v646_v55 = vadd.f32 %v644_v49, %v629_v25 }
 0x126   : > { %v662_v0 = vpop.permute.xlu0 %661 }
 0x129   : > { %v606_v44 = vpop.f32.mrf.mxu3  ;;  %v635_v45 = vpop.f32.mrf.mxu2 }
 0x12a   : > { %v649_v52 = vmul.f32 %v647_v50, %v606_v44  ;;  %v650_v53 = vmul.f32 %v648_v51, %v635_v45 }
 0x12c   : > { %v651_v32 = vadd.f32 %v649_v52, %v645_v54  ;;  %v652_v60 = vadd.f32 %v650_v53, %v646_v55 }
 0x131   : > { %v609_v58 = vpop.f32.mrf.mxu3  ;;  %v638_v59 = vpop.f32.mrf.mxu2 }
 0x132   : > { %v655_v33 = vmul.f32 %v653_v56, %v609_v58  ;;  %v656_v61 = vmul.f32 %v654_v57, %v638_v59 }
 0x134   : > { %v657_v62 = vadd.f32 %v655_v33, %v651_v32  ;;  %v658_v63 = vadd.f32 %v656_v61, %v652_v60 }
 0x136   : > { %680 = vmatmul.f32.vlgmr.msrb.gmra.mxu0 %v657_v62  ;;  %700 = vmatmul.f32.vlgmr.msrb.gmra.mxu1 %v658_v63 }
 0x1b3   : > { %v681_v1 = vpop.f32.mrf.mxu0  ;;  %v701_v3 = vpop.f32.mrf.mxu1 }
 0x1b4   : > { %v682_v2 = vadd.f32 %v681_v1, %v662_v0 }
 0x1b6   : > { %v702_v4 = vadd.f32 %v701_v3, %v682_v2 }
 0x1b8   : > { %704 = vst [vmem:[%s332_s20] sm:$0xff] %v702_v4 }
 0x1b9 PF: > { %s17_s26 = sadd.s32 1, %s864_s26   ;;  %s1292_s24 = smov %s860_s25 }
 0x1ba   : > { %p14_p5 = scmp.ge.s32.totalorder %s17_s26, 4   ;;  %s1293_s25 = smov %s1295_s27 }
 0x1bc   :  { %16 = sbr.rel (!%p14_p5) target bundleno = 2 (0x2), region = 81 }

</bundles_post_ra>
